<compile_context>
chip_gen: v6e
topology: v6e:2x2x1
jax: 0.10.0
libtpu: 0.0.40
codegen_flags: <defaults>
</compile_context>

<pallas_src>
import jax
import jax.numpy as jnp
import numpy as np
from jax import lax
from jax.experimental import pallas as pl
from jax.experimental.pallas import tpu as pltpu


_OUT_PAD = 128  # lane-dense padded width for the 2-wide predict head


def _fused_kernel(ero_ref, wc_ref, d_ref, w3p_ref, b3p_ref, out_ref):
    # ero_ref : (bt, S, 3E)   concatenated [e, r, o] embeddings
    # wc_ref  : (3E, E)       folded combine @ linear1 @ linear2 weight
    # d_ref   : (1, E)        folded bias
    # w3p_ref : (E, 128)      folded linear3 @ predict weight (zero lane-padded)
    # b3p_ref : (1, 128)      folded bias (zero lane-padded)
    # out_ref : (bt, 1, 128)

    # Single K=3E MXU contraction over the last axis; lane axis (E) untouched.
    h = lax.dot_general(
        ero_ref[...], wc_ref[...],
        dimension_numbers=(((2,), (0,)), ((), ())),
        preferred_element_type=jnp.float32) + d_ref[...]           # (bt, S, E)

    # permute(0,2,1) + MaxPool1d(seq_len) + squeeze == max over the seq axis.
    pooled = jnp.max(h, axis=1, keepdims=True)                     # (bt, 1, E)

    # Folded linear3 @ predict; output kept 128-wide for an unmasked store.
    out_ref[...] = lax.dot_general(
        pooled, w3p_ref[...],
        dimension_numbers=(((2,), (0,)), ((), ())),
        preferred_element_type=jnp.float32) + b3p_ref[...]         # (bt, 1, 128)


def init_params(key, n_e_embeddings, n_r_embeddings, embed_size):
    E = embed_size
    ks = jax.random.split(key, 12)
    scale = 0.05

    def w(k, shape):
        return (scale * jax.random.normal(k, shape)).astype(jnp.float32)

    params = {
        "e_emb": w(ks[0], (n_e_embeddings, E)),
        "r_emb": w(ks[1], (n_r_embeddings, E)),
        "o_emb": w(ks[2], (n_e_embeddings, E)),
        # combine: Linear(3E, E) stored transposed (in, out), split into the
        # three (E, E) chunks that multiply e, r, o respectively.
        "wce": w(ks[3], (E, E)),
        "wcr": w(ks[4], (E, E)),
        "wco": w(ks[5], (E, E)),
        "bc": w(ks[6], (1, E)),
        "w1": w(ks[7], (E, E)),
        "b1": w(ks[8], (1, E)),
        "w2": w(ks[9], (E, E)),
        "b2": w(ks[10], (1, E)),
        "w3": w(ks[11], (E, E)),
        "b3": jnp.zeros((1, E), jnp.float32),
        # predict: Linear(E, 2, bias=False), stored (in, out).
        "wp": (scale * jax.random.normal(jax.random.fold_in(key, 99), (E, 2))
               ).astype(jnp.float32),
    }
    return params


def fold_params(params):
    """Fold the activation-free linear chain once (pure JAX, outside the kernel).

    combine -> linear1 -> linear2 have no nonlinearity between them, so
        ((cat(e,r,o) @ Wc + bc) @ W1 + b1) @ W2 + b2
      == cat(e,r,o) @ (Wc @ W1 @ W2) + (bc @ W1 @ W2 + b1 @ W2 + b2)
    and linear3 -> predict folds to (W3 @ Wp, b3 @ Wp).
    Dropouts are identity at inference.
    """
    E = params["w1"].shape[0]
    w12 = params["w1"] @ params["w2"]                               # (E, E)
    wc = jnp.concatenate([params["wce"] @ w12,
                          params["wcr"] @ w12,
                          params["wco"] @ w12], axis=0)             # (3E, E)
    d = (params["bc"] @ w12 + params["b1"] @ params["w2"]
         + params["b2"])                                            # (1, E)
    w3p = params["w3"] @ params["wp"]                               # (E, 2)
    b3p = params["b3"] @ params["wp"]                               # (1, 2)
    # Zero-pad the 2-wide head to 128 lanes (slice [:, :2] in the wrapper).
    w3p_pad = jnp.zeros((E, _OUT_PAD), jnp.float32).at[:, :w3p.shape[1]].set(w3p)
    b3p_pad = jnp.zeros((1, _OUT_PAD), jnp.float32).at[:, :b3p.shape[1]].set(b3p)
    return {
        "e_emb": params["e_emb"], "r_emb": params["r_emb"],
        "o_emb": params["o_emb"],
        "wc": wc, "d": d, "w3p_pad": w3p_pad, "b3p_pad": b3p_pad,
    }


def transformer_forward(x, folded, *, row_tile=None):
    # Embedding gathers + feature concat: glue in plain JAX / XLA.
    e = jnp.take(folded["e_emb"], x[:, :, 0], axis=0)               # (B, S, E)
    r = jnp.take(folded["r_emb"], x[:, :, 1], axis=0)
    o = jnp.take(folded["o_emb"], x[:, :, 2], axis=0)
    ero = jnp.concatenate([e, r, o], axis=-1)                       # (B, S, 3E)
    B, S, K3 = ero.shape
    E = K3 // 3

    if row_tile is None:
        # Small batch: one row per grid step so both TCs (v7x) get work and the
        # pipeliner can double-buffer. Larger batch: 8 rows/step stays tiny in
        # VMEM (8 * S * 3E * 4B activations, double-buffered).
        row_tile = 1 if B <= 16 else 8
    grid = (pl.cdiv(B, row_tile),)

    cost = pl.CostEstimate(
        flops=2 * B * S * K3 * E + 2 * B * E * _OUT_PAD,
        transcendentals=0,
        bytes_accessed=4 * (ero.size + folded["wc"].size + folded["d"].size
                            + folded["w3p_pad"].size
                            + folded["b3p_pad"].size + B * _OUT_PAD),
    )

    out = pl.pallas_call(
        _fused_kernel,
        out_shape=jax.ShapeDtypeStruct((B, 1, _OUT_PAD), jnp.float32),
        grid=grid,
        in_specs=[
            pl.BlockSpec((row_tile, S, K3), lambda i: (i, 0, 0)),    # activations
            pl.BlockSpec((K3, E), lambda i: (0, 0)),                 # resident weights
            pl.BlockSpec((1, E), lambda i: (0, 0)),
            pl.BlockSpec((E, _OUT_PAD), lambda i: (0, 0)),
            pl.BlockSpec((1, _OUT_PAD), lambda i: (0, 0)),
        ],
        out_specs=pl.BlockSpec((row_tile, 1, _OUT_PAD), lambda i: (i, 0, 0)),
        compiler_params=pltpu.CompilerParams(
            dimension_semantics=("parallel",),
            vmem_limit_bytes=32 * 1024 * 1024),
        cost_estimate=cost,
    )(ero, folded["wc"], folded["d"], folded["w3p_pad"], folded["b3p_pad"])

    return out[:, 0, :2]                                            # (B, 2)


def reference_forward(x, params):
    """Unfolded, layer-by-layer reference matching the PyTorch forward."""
    e = jnp.take(params["e_emb"], x[:, :, 0], axis=0)
    r = jnp.take(params["r_emb"], x[:, :, 1], axis=0)
    o = jnp.take(params["o_emb"], x[:, :, 2], axis=0)
    h = (e @ params["wce"] + r @ params["wcr"] + o @ params["wco"]
         + params["bc"])
    h = h @ params["w1"] + params["b1"]
    h = h @ params["w2"] + params["b2"]
    pooled = jnp.max(h, axis=1)                                     # (B, E)
    h3 = pooled @ params["w3"] + params["b3"]
    return h3 @ params["wp"]                                        # (B, 2)


if __name__ == "__main__":
    # Shapes implied by the module spec: embed_size=128, seq_len=64; small batch.
    B, S, E = 2, 64, 128
    n_e_embeddings, n_r_embeddings = 64, 16

    key = jax.random.PRNGKey(0)
    k_params, k_e, k_r, k_o = jax.random.split(key, 4)
    params = init_params(k_params, n_e_embeddings, n_r_embeddings, E)
    folded = fold_params(params)

    x = jnp.stack(
        [jax.random.randint(k_e, (B, S), 0, n_e_embeddings),
         jax.random.randint(k_r, (B, S), 0, n_r_embeddings),
         jax.random.randint(k_o, (B, S), 0, n_e_embeddings)],
        axis=-1).astype(jnp.int32)                                  # (B, S, 3)

    out = jax.block_until_ready(transformer_forward(x, folded))
    ref = jax.block_until_ready(reference_forward(x, params))

    # Weight folding reassociates f32 sums -> slightly looser tolerance.
    np.testing.assert_allclose(np.asarray(out), np.asarray(ref),
                               rtol=1e-4, atol=1e-5)

    print("KERNEL_OK")
</pallas_src>

<mosaic_0001>
module attributes {stable_mosaic.version = 11 : i64} {
  func.func @_fused_kernel(%arg0: i32, %arg1: memref<1x64x384xf32, #tpu.memory_space<vmem>>, %arg2: memref<384x128xf32, #tpu.memory_space<vmem>>, %arg3: memref<1x128xf32, #tpu.memory_space<vmem>>, %arg4: memref<128x128xf32, #tpu.memory_space<vmem>>, %arg5: memref<1x128xf32, #tpu.memory_space<vmem>>, %arg6: memref<1x1x128xf32, #tpu.memory_space<vmem>>) attributes {dimension_semantics = [#tpu.dimension_semantics<parallel>], iteration_bounds = array<i64: 2>, scalar_prefetch = 0 : i64, scratch_operands = 0 : i64, tpu.core_type = #tpu.core_type<tc>, window_params = [{transform_indices = @transform_0, window_bounds = array<i64: 1, 64, 384>}, {pipeline_mode = #tpu.pipeline_mode<synchronous>, transform_indices = @transform_1, window_bounds = array<i64: 384, 128>}, {pipeline_mode = #tpu.pipeline_mode<synchronous>, transform_indices = @transform_2, window_bounds = array<i64: 1, 128>}, {pipeline_mode = #tpu.pipeline_mode<synchronous>, transform_indices = @transform_3, window_bounds = array<i64: 128, 128>}, {pipeline_mode = #tpu.pipeline_mode<synchronous>, transform_indices = @transform_4, window_bounds = array<i64: 1, 128>}, {transform_indices = @transform_5, window_bounds = array<i64: 1, 1, 128>}]} {
    %c0 = arith.constant 0 : index
    %c0_0 = arith.constant 0 : index
    %c0_1 = arith.constant 0 : index
    %0 = vector.load %arg1[%c0, %c0_0, %c0_1] : memref<1x64x384xf32, #tpu.memory_space<vmem>>, vector<1x64x384xf32>
    %c0_2 = arith.constant 0 : index
    %c0_3 = arith.constant 0 : index
    %1 = vector.load %arg2[%c0_2, %c0_3] : memref<384x128xf32, #tpu.memory_space<vmem>>, vector<384x128xf32>
    %cst = arith.constant dense<0.000000e+00> : vector<1x64x128xf32>
    %2 = tpu.matmul %0, %1, %cst {dimension_numbers = #tpu.dot_dimension_numbers<[2], [0], [0, 1], [1], [0, 0, 0, 1, 1, 1], [], []>} : vector<1x64x384xf32>, vector<384x128xf32>, vector<1x64x128xf32> -> vector<1x64x128xf32>
    %c0_4 = arith.constant 0 : index
    %c0_5 = arith.constant 0 : index
    %3 = vector.load %arg3[%c0_4, %c0_5] : memref<1x128xf32, #tpu.memory_space<vmem>>, vector<1x128xf32>
    %4 = vector.shape_cast %3 : vector<1x128xf32> to vector<1x1x128xf32>
    %5 = vector.broadcast %4 : vector<1x1x128xf32> to vector<1x64x128xf32>
    %6 = arith.addf %2, %5 : vector<1x64x128xf32>
    %cst_6 = arith.constant dense<0xFF800000> : vector<1x128xf32>
    %7 = vector.multi_reduction <maximumf>, %6, %cst_6 [1] : vector<1x64x128xf32> to vector<1x128xf32>
    %8 = vector.shape_cast %7 : vector<1x128xf32> to vector<1x1x128xf32>
    %c0_7 = arith.constant 0 : index
    %c0_8 = arith.constant 0 : index
    %9 = vector.load %arg4[%c0_7, %c0_8] : memref<128x128xf32, #tpu.memory_space<vmem>>, vector<128x128xf32>
    %cst_9 = arith.constant dense<0.000000e+00> : vector<1x1x128xf32>
    %10 = tpu.matmul %8, %9, %cst_9 {dimension_numbers = #tpu.dot_dimension_numbers<[2], [0], [0, 1], [1], [0, 0, 0, 1, 1, 1], [], []>} : vector<1x1x128xf32>, vector<128x128xf32>, vector<1x1x128xf32> -> vector<1x1x128xf32>
    %c0_10 = arith.constant 0 : index
    %c0_11 = arith.constant 0 : index
    %11 = vector.load %arg5[%c0_10, %c0_11] : memref<1x128xf32, #tpu.memory_space<vmem>>, vector<1x128xf32>
    %12 = vector.shape_cast %11 : vector<1x128xf32> to vector<1x1x128xf32>
    %13 = arith.addf %10, %12 : vector<1x1x128xf32>
    %c0_12 = arith.constant 0 : index
    %c0_13 = arith.constant 0 : index
    %c0_14 = arith.constant 0 : index
    %14 = vector.load %arg6[%c0_12, %c0_13, %c0_14] : memref<1x1x128xf32, #tpu.memory_space<vmem>>, vector<1x1x128xf32>
    tpu.vector_store %arg6[%c0_12, %c0_13, %c0_14], %13 {strides = array<i32>} : memref<1x1x128xf32, #tpu.memory_space<vmem>>, vector<1x1x128xf32>,
    return
  }
  func.func @transform_0(%arg0: i32) -> (i32, i32, i32) {
    %c0_i32 = arith.constant 0 : i32
    %c0_i32_0 = arith.constant 0 : i32
    %c0_i32_1 = arith.constant 0 : i32
    return %arg0, %c0_i32, %c0_i32_0 : i32, i32, i32
  }
  func.func @transform_1(%arg0: i32) -> (i32, i32) {
    %c0_i32 = arith.constant 0 : i32
    %c0_i32_0 = arith.constant 0 : i32
    %c0_i32_1 = arith.constant 0 : i32
    return %c0_i32, %c0_i32_0 : i32, i32
  }
  func.func @transform_2(%arg0: i32) -> (i32, i32) {
    %c0_i32 = arith.constant 0 : i32
    %c0_i32_0 = arith.constant 0 : i32
    %c0_i32_1 = arith.constant 0 : i32
    return %c0_i32, %c0_i32_0 : i32, i32
  }
  func.func @transform_3(%arg0: i32) -> (i32, i32) {
    %c0_i32 = arith.constant 0 : i32
    %c0_i32_0 = arith.constant 0 : i32
    %c0_i32_1 = arith.constant 0 : i32
    return %c0_i32, %c0_i32_0 : i32, i32
  }
  func.func @transform_4(%arg0: i32) -> (i32, i32) {
    %c0_i32 = arith.constant 0 : i32
    %c0_i32_0 = arith.constant 0 : i32
    %c0_i32_1 = arith.constant 0 : i32
    return %c0_i32, %c0_i32_0 : i32, i32
  }
  func.func @transform_5(%arg0: i32) -> (i32, i32, i32) {
    %c0_i32 = arith.constant 0 : i32
    %c0_i32_0 = arith.constant 0 : i32
    %c0_i32_1 = arith.constant 0 : i32
    return %arg0, %c0_i32, %c0_i32_0 : i32, i32, i32
  }
}

</mosaic_0001>

<bundles_post_ra>
// kernel: tpu_custom_call.1
= control target key start
LH: loop header
LB: loop body
LE: loop exit
PB: predicated region body
PF: predicated region fallthrough
CT: control target
= control target key end

     0   :  { %10 = vsyncpa [#allocation3], 0  ;;  %s1427_s0 = inlined_call_operand.hbm [shape: f32[2,64,384], index: 0, kind: input, shape index: {}]   ;;  %s1428_s1 = inlined_call_operand.hbm [shape: f32[384,128], index: 1, kind: input, shape index: {}]   ;;  %s1429_s2 = inlined_call_operand.vmem [shape: f32[1,128], index: 2, kind: input, shape index: {}]   ;;  %s1430_s3 = inlined_call_operand.hbm [shape: f32[128,128], index: 3, kind: input, shape index: {}]   ;;  %s1431_s4 = inlined_call_operand.vmem [shape: f32[1,128], index: 4, kind: input, shape index: {}]   ;;  %s1432_s5 = inlined_call_operand.hbm [shape: f32[2,1,128], index: 5, kind: output, shape index: {}]  }
   0x1   :  { %12 = vsyncpa [#allocation3 + $0x1], 0 }
   0x2   :  { %13 = vsyncpa [#allocation6], 0 }
   0x3   :  { %14 = vsyncpa [#allocation4], 0 }
   0x4   :  { %16 = vsyncpa [#allocation4 + $0x1], 0  ;;  %s1214_s18 = smov 0   ;;  %s1216_s19 = smov 0  }
   0x5   :  { %s1218_s20 = smov 0   ;;  %s1220_s21 = smov 0  }
   0x6 LB: > { %s1235_s22 = sadd.s32 4294967295, %s1172_s21   ;;  %s759_s23 = sadd.s32 4294967294, %s1172_s21   ;;  %s1172_s21 = sphi %s1220_s21, %s1454_s21   ;;  %s1168_s20 = sphi %s1218_s20, %s1453_s20   ;;  %s1164_s19 = sphi %s1216_s19, %s1452_s19   ;;  %s1160_s18 = sphi %s1214_s18, %s1451_s18  }
   0x7   : > { %p42_p0 = scmp.ne.s32.totalorder %s1164_s19, %s1160_s18  ;;  %p1433_p1 = scmp.eq.s32.totalorder %s1235_s22, 0 }
   0x8   : > { %p156_p3 = scmp.eq.s32.totalorder %s759_s23, 1  ;;  %p760_p5 = scmp.ge.s32.totalorder %s1172_s21, 1 }
   0x9   : > { %p1244_p4 = por %p1433_p1, %p42_p0  ;;  %p163_p7 = scmp.lt.s32.totalorder %s1172_s21, 3 }
   0xa   : > { %p1249_p6 = por %p156_p3, %p42_p0  ;;  %s1174_s27 = smov [#allocation5]  }
   0xb   : > { %s1437_s24 = scalar_select %p1244_p4, 1, 0 }
   0xc   : > { %s1438_s25 = scalar_select %p1249_p6, 1, 0 }
   0xd   : > { %p1254_p8 = pnand %p760_p5, %p163_p7  ;;  %s175_s28 = sshll.u32 %s1174_s27, 4  ;;  %s176_s28 = int_to_ptr.vmem [resolvable:$true] %s175_s28 }
   0xe   : > { %s1175_s30 = smov [#allocation7]   ;;  %s1035_s7 = scalar_lea.vmem %s176_s28, 6144 }
   0xf   : > { %s1439_s26 = scalar_select %p1254_p8, 1, 0 }
  0x10   : > { %p963_p9 = pneg %p1254_p8  ;;  %s191_s6 = sshll.u32 %s1175_s30, 4  ;;  %s192_s6 = int_to_ptr.vmem [resolvable:$true] %s191_s6 }
  0x11   : > { %p1036_p13 = scmp.ne.s32.totalorder %s176_s28, %s1035_s7  ;;  %p1043_p5 = scmp.lt.s32.totalorder %s176_s28, %s176_s28 }
  0x12   : > { %p1263_p11 = pnand %p963_p9, %p1433_p1  ;;  %p1044_p7 = scmp.lt.s32.totalorder %s1035_s7, %s1035_s7 }
  0x14   : > { %p1026_p12 = pneg %p1263_p11  ;;  %p1045_p10 = por %p1044_p7, %p1043_p5 }
  0x16   : > { %p1038_p0 = pnand %p1036_p13, %p1026_p12 }
  0x18   : > { %p1039_p3 = pneg %p1038_p0 }
  0x1a   : > { %p1046_p9 = pnand %p1045_p10, %p1039_p3 }
  0x1c   : > { %1049 = shalt.err (!%p1046_p9)
}
  0x1d   : > { %s1176_s8 = smov 128   ;;  %s1177_s9 = smov 8  }
  0x1e   : > { %966 = dma.hbm_to_vmem [thread:$0]  (!%p1263_p11), %s1428_s1, 6144, %s176_s28, [#allocation6], %s1176_s8, %s1176_s8, %s1177_s9  }
  0x1f   : > { %s1061_s12 = scalar_lea.vmem %s192_s6, 2048  ;;  %p1069_p2 = scmp.lt.s32.totalorder %s192_s6, %s192_s6 }
  0x20   : > { %p1062_p1 = scmp.ne.s32.totalorder %s192_s6, %s1061_s12  ;;  %p1070_p6 = scmp.lt.s32.totalorder %s1061_s12, %s1061_s12 }
  0x22   : > { %p1064_p13 = pnand %p1062_p1, %p1026_p12  ;;  %p1071_p5 = por %p1070_p6, %p1069_p2 }
  0x24   : > { %p1065_p0 = pneg %p1064_p13 }
  0x26   : > { %p1072_p10 = pnand %p1071_p5, %p1065_p0 }
  0x28   : > { %1075 = shalt.err (!%p1072_p10)
}
  0x29   : > { %969 = dma.hbm_to_vmem [thread:$0]  (!%p1263_p11), %s1430_s3, 2048, %s192_s6, [#allocation6], %s1176_s8, %s1176_s8, %s1177_s9  }
  0x2a   : > { %s1286_s15 = sadd.s32 1, %s1172_s21   ;;  %s29_s16 = sadd.s32 1, %s1168_s20 }
  0x2b   : > { %s26_s17 = ssub.s32 %s1172_s21, %s1286_s15  ;;  %p36_p1 = scmp.ne.s32.totalorder %s1168_s20, %s1164_s19 }
  0x2c   : > { %p27_p2 = scmp.eq.s32.totalorder %s26_s17, 0  ;;  %p37_p6 = scmp.eq.s32.totalorder %s1172_s21, 0 }
  0x2d   : > { %p1441_p12 = scmp.eq.s32.totalorder %s1235_s22, 1  ;;  %p980_p7 = scmp.lt.s32.totalorder %s1172_s21, 2 }
  0x2e   : > { %s1302_s27 = scalar_select %p27_p2, %s1168_s20, %s29_s16  }
  0x2f   : > { %p1296_p3 = por %p1441_p12, %p36_p1  ;;  %p38_p9 = por %p37_p6, %p36_p1 }
  0x30   : > { %s208_s28 = sand.u32 1, %s1168_s20   ;;  %s949_s30 = smul.u32 3072, %s1172_s21 }
  0x31   : > { %s1442_s23 = scalar_select %p1296_p3, 1, 0 }
  0x32   : > { %s948_s29 = smul.u32 192, %s208_s28  ;;  %p1306_p11 = pnand %p980_p7, %p38_p9 }
  0x33   : > { %s1313_s9 = scalar_lea.hbm %s1427_s0, %s949_s30  ;;  %s1317_s12 = scalar_lea.sflag [#allocation3], %s208_s28 }
  0x34   : > { %s212_s10 = scalar_lea.vmem [#allocation2], %s948_s29  ;;  %s1076_s13 = scalar_lea.hbm %s1313_s9, 3072 }
  0x35   : > { %s219_s11 = sshll.u32 %s212_s10, 4  ;;  %p1077_p13 = scmp.ne.s32.totalorder %s1313_s9, %s1076_s13  ;;  %s1315_s11 = int_to_ptr.vmem [resolvable:$true] %s219_s11 }
  0x36   : > { %p1078_p0 = pneg %p1306_p11  ;;  %s1081_s17 = scalar_lea.hbm %s1427_s0, 6144 }
  0x37   : > { %p1082_p1 = scmp.lt.s32.totalorder %s1313_s9, %s1427_s0  ;;  %p1083_p2 = scmp.lt.s32.totalorder %s1081_s17, %s1076_s13 }
  0x38   : > { %p1079_p5 = pnand %p1078_p0, %p1077_p13 }
  0x39   : > { %p1084_p6 = por %p1083_p2, %p1082_p1 }
  0x3a   : > { %p1080_p10 = pneg %p1079_p5 }
  0x3c   : > { %p1085_p12 = pnand %p1084_p6, %p1080_p10 }
  0x3e   : > { %1088 = shalt.err (!%p1085_p12)
}
  0x3f   : > { %s1089_s28 = scalar_lea.vmem %s1315_s11, 3072  ;;  %s1178_s29 = smov [#allocation2]  }
  0x40   : > { %p1090_p7 = scmp.ne.s32.totalorder %s1315_s11, %s1089_s28  ;;  %s1094_s8 = sshll.u32 %s1178_s29, 4  ;;  %s1095_s8 = int_to_ptr.vmem [resolvable:$false] %s1094_s8 }
  0x41   : > { %s1096_s10 = scalar_lea.vmem %s1095_s8, 6144  ;;  %p1097_p5 = scmp.lt.s32.totalorder %s1315_s11, %s1095_s8 }
  0x42   : > { %p1092_p9 = pnand %p1090_p7, %p1078_p0  ;;  %p1098_p3 = scmp.lt.s32.totalorder %s1096_s10, %s1089_s28 }
  0x44   : > { %p1093_p13 = pneg %p1092_p9  ;;  %p1099_p4 = por %p1098_p3, %p1097_p5 }
  0x46   : > { %p1100_p8 = pnand %p1099_p4, %p1093_p13 }
  0x48   : > { %1103 = shalt.err (!%p1100_p8)
}
  0x49   : > { %s1179_s13 = smov 384   ;;  %s1180_s14 = smov 24  }
  0x4a   : > { %973 = dma.hbm_to_vmem [thread:$0]  (!%p1306_p11), %s1313_s9, 3072, %s1315_s11, %s1317_s12, %s1179_s13, %s1179_s13, %s1180_s14  }
  0x4b   : > { %p1444_p0 = scmp.ne.s32.totalorder %s1439_s26, 0 }
  0x4c   : > { %s1341_s16 = sand.u32 (!%p1444_p0), 1, %s1164_s19   ;;  %p1445_p4 = scmp.ne.s32.totalorder (!%p1444_p0), %s1437_s24, 0 }
  0x4d   : > { %231 = sbr.rel (%p1444_p0) target bundleno = 574 (0x23e), region = 40  ;;  %s234_s30 = scalar_lea.sflag (!%p1444_p0), [#allocation3], %s1341_s16 }
  0x4e   : > { %s950_s17 = smul.u32 (!%p1444_p0), 192, %s1341_s16 }
  0x50   : > { %s1345_s7 = scalar_lea.vmem (!%p1444_p0), [#allocation2], %s950_s17 }
  0x52   : > { %1147 = dma.done.wait (%p1445_p4), %s234_s30, 3072  }
  0x53   : > { %1149 = vsyncadd (%p1445_p4), %s234_s30, 4294964224  ;;  %p1446_p8 = scmp.eq.s32.totalorder %s1235_s22, 0 }
  0x55   : > { %1151 = dma.done.wait (%p1446_p8), [#allocation6], 8192   ;;  %p1447_p3 = pmov %p1446_p8 }
  0x56   : > { %v326_v0 = vld [vmem:[#allocation5 + $0xf8] sm:$0xff]  ;;  %v325_v2 = vld [vmem:[#allocation5 + $0xf0] sm:$0xff]  ;;  %v324_v5 = vld [vmem:[#allocation5 + $0xe8] sm:$0xff]  ;;  %vm1182_vm0 = vmmov 0   ;;  %s769_s11 = sshll.u32 %s1235_s22, 4  ;;  %s270_s12 = scalar_lea.vmem [#allocation8], %s1341_s16 }
  0x57   : > { %1153 = vsyncadd (%p1447_p3), [#allocation6], 4294959104  ;;  %v310_v1 = vld [vmem:[#allocation5 + $0x78] sm:$0xff]  ;;  %772 = vmatprep.subr.mxu0 %v326_v0  ;;  %v309_v3 = vld [vmem:[#allocation5 + $0x70] sm:$0xff]  ;;  %s674_s28 = sshll.u32 %s270_s12, 4  ;;  %s1390_s10 = scalar_lea.hbm %s1432_s5, %s769_s11  ;;  %s675_s28 = int_to_ptr.vmem [resolvable:$true] %s674_s28 }
  0x58   : > { %v342_v4 = vld [vmem:[#allocation5 + $0x178] sm:$0xff]  ;;  %773 = vmatpush3.msra.mxu0 %v310_v1  ;;  %v341_v6 = vld [vmem:[#allocation5 + $0x170] sm:$0xff]  ;;  %v308_v7 = vld [vmem:[#allocation5 + $0x68] sm:$0xff]  ;;  %s662_s13 = scalar_lea.sflag [#allocation4], %s1341_s16  ;;  %s1104_s14 = scalar_lea.vmem %s675_s28, 16 }
  0x59   : > { %869 = vmatprep.subr.mxu1 %v342_v4  ;;  %774 = vmatprep.subr.mxu0 %v325_v2  ;;  %v340_v8 = vld [vmem:[#allocation5 + $0x168] sm:$0xff]  ;;  %v323_v9 = vld [vmem:[#allocation5 + $0xe0] sm:$0xff]  ;;  %v322_v12 = vld [vmem:[#allocation5 + $0xd8] sm:$0xff]  ;;  %p1105_p11 = scmp.ne.s32.totalorder %s675_s28, %s1104_s14  ;;  %p1448_p10 = scmp.ne.s32.totalorder %s1442_s23, 0 }
  0x5a   : > { %870 = vmatpush3.msra.mxu1 %v342_v4  ;;  %775 = vmatpush3.msra.mxu0 %v309_v3  ;;  %v307_v10 = vld [vmem:[#allocation5 + $0x60] sm:$0xff]  ;;  %v306_v13 = vld [vmem:[#allocation5 + $0x58] sm:$0xff]  ;;  %v321_v15 = vld [vmem:[#allocation5 + $0xd0] sm:$0xff]  ;;  %s1183_s17 = smov [#allocation8]  }
  0x5b   : > { %871 = vmatprep.subr.mxu1 %v341_v6  ;;  %776 = vmatprep.subr.mxu0 %v324_v5  ;;  %v339_v11 = vld [vmem:[#allocation5 + $0x160] sm:$0xff]  ;;  %v338_v14 = vld [vmem:[#allocation5 + $0x158] sm:$0xff]  ;;  %v305_v16 = vld [vmem:[#allocation5 + $0x50] sm:$0xff]  ;;  %p1106_p1 = pnand %p1105_p11, %p1448_p10  ;;  %s1108_s22 = sshll.u32 %s1183_s17, 4  ;;  %s1109_s22 = int_to_ptr.vmem [resolvable:$false] %s1108_s22 }
  0x5c   : > { %872 = vmatpush3.msra.mxu1 %v341_v6  ;;  %777 = vmatpush3.msra.mxu0 %v308_v7  ;;  %v337_v17 = vld [vmem:[#allocation5 + $0x150] sm:$0xff]  ;;  %v320_v18 = vld [vmem:[#allocation5 + $0xc8] sm:$0xff]  ;;  %v319_v21 = vld [vmem:[#allocation5 + $0xc0] sm:$0xff]  ;;  %s1110_s30 = scalar_lea.vmem %s1109_s22, 32  ;;  %p1111_p6 = scmp.lt.s32.totalorder %s675_s28, %s1109_s22 }
  0x5d   : > { %873 = vmatprep.subr.mxu1 %v340_v8  ;;  %778 = vmatprep.subr.mxu0 %v323_v9  ;;  %v304_v19 = vld [vmem:[#allocation5 + $0x48] sm:$0xff]  ;;  %v303_v22 = vld [vmem:[#allocation5 + $0x40] sm:$0xff]  ;;  %v318_v24 = vld [vmem:[#allocation5 + $0xb8] sm:$0xff]  ;;  %p1107_p2 = pneg %p1106_p1  ;;  %p1112_p12 = scmp.lt.s32.totalorder %s1110_s30, %s1104_s14 }
  0x5e   : > { %874 = vmatpush3.msra.mxu1 %v340_v8  ;;  %779 = vmatpush3.msra.mxu0 %v307_v10  ;;  %v336_v20 = vld [vmem:[#allocation5 + $0x148] sm:$0xff]  ;;  %v335_v23 = vld [vmem:[#allocation5 + $0x140] sm:$0xff]  ;;  %v302_v25 = vld [vmem:[#allocation5 + $0x38] sm:$0xff]  ;;  %v1181_v8 = vmov 0.0  }
  0x5f   : > { %875 = vmatprep.subr.mxu1 %v339_v11  ;;  %780 = vmatprep.subr.mxu0 %v322_v12  ;;  %v334_v26 = vld [vmem:[#allocation5 + $0x138] sm:$0xff]  ;;  %v317_v27 = vld [vmem:[#allocation5 + $0xb0] sm:$0xff]  ;;  %v316_v30 = vld [vmem:[#allocation5 + $0xa8] sm:$0xff]  ;;  %p1113_p7 = por %p1112_p12, %p1111_p6 }
  0x60   : > { %876 = vmatpush3.msra.mxu1 %v339_v11  ;;  %781 = vmatpush3.msra.mxu0 %v306_v13  ;;  %v301_v28 = vld [vmem:[#allocation5 + $0x30] sm:$0xff]  ;;  %v300_v31 = vld [vmem:[#allocation5 + $0x28] sm:$0xff]  ;;  %v315_v33 = vld [vmem:[#allocation5 + $0xa0] sm:$0xff] }
  0x61   : > { %877 = vmatprep.subr.mxu1 %v338_v14  ;;  %782 = vmatprep.subr.mxu0 %v321_v15  ;;  %v333_v29 = vld [vmem:[#allocation5 + $0x130] sm:$0xff]  ;;  %v332_v32 = vld [vmem:[#allocation5 + $0x128] sm:$0xff]  ;;  %v299_v34 = vld [vmem:[#allocation5 + $0x20] sm:$0xff]  ;;  %p1114_p9 = pnand %p1113_p7, %p1107_p2 }
  0x62   : > { %878 = vmatpush3.msra.mxu1 %v338_v14  ;;  %783 = vmatpush3.msra.mxu0 %v305_v16  ;;  %v331_v35 = vld [vmem:[#allocation5 + $0x120] sm:$0xff]  ;;  %v314_v36 = vld [vmem:[#allocation5 + $0x98] sm:$0xff]  ;;  %v313_v39 = vld [vmem:[#allocation5 + $0x90] sm:$0xff] }
  0x63   : > { %879 = vmatprep.subr.mxu1 %v337_v17  ;;  %784 = vmatprep.subr.mxu0 %v320_v18  ;;  %v298_v37 = vld [vmem:[#allocation5 + $0x18] sm:$0xff]  ;;  %v297_v40 = vld [vmem:[#allocation5 + $0x10] sm:$0xff]  ;;  %v312_v42 = vld [vmem:[#allocation5 + $0x88] sm:$0xff] }
  0x64   : > { %880 = vmatpush3.msra.mxu1 %v337_v17  ;;  %785 = vmatpush3.msra.mxu0 %v304_v19  ;;  %v330_v38 = vld [vmem:[#allocation5 + $0x118] sm:$0xff]  ;;  %v329_v41 = vld [vmem:[#allocation5 + $0x110] sm:$0xff]  ;;  %v272_v43 = vld [vmem:[%s1345_s7 + $0x8] sm:$0xff] }
  0x65   : > { %881 = vmatprep.subr.mxu1 %v336_v20  ;;  %786 = vmatprep.subr.mxu0 %v319_v21  ;;  %v296_v44 = vld [vmem:[#allocation5 + $0x8] sm:$0xff]  ;;  %v311_v45 = vld [vmem:[#allocation5 + $0x80] sm:$0xff]  ;;  %v273_v51 = vld [vmem:[%s1345_s7 + $0x10] sm:$0xff] }
  0x66   : > { %882 = vmatpush3.msra.mxu1 %v336_v20  ;;  %787 = vmatpush3.msra.mxu0 %v303_v22  ;;  %v328_v46 = vld [vmem:[#allocation5 + $0x108] sm:$0xff]  ;;  %v295_v47 = vld [vmem:[#allocation5] sm:$0xff]  ;;  %v274_v53 = vld [vmem:[%s1345_s7 + $0x18] sm:$0xff] }
  0x67   : > { %883 = vmatprep.subr.mxu1 %v335_v23  ;;  %788 = vmatprep.subr.mxu0 %v318_v24  ;;  %v271_v48 = vld [vmem:[%s1345_s7] sm:$0xff]  ;;  %v276_v52 = vld [vmem:[%s1345_s7 + $0x28] sm:$0xff]  ;;  %v278_v55 = vld [vmem:[%s1345_s7 + $0x38] sm:$0xff] }
  0x68   : > { %884 = vmatpush3.msra.mxu1 %v335_v23  ;;  %789 = vmatpush3.msra.mxu0 %v302_v25  ;;  %v327_v49 = vld [vmem:[#allocation5 + $0x100] sm:$0xff]  ;;  %v282_v56 = vld [vmem:[%s1345_s7 + $0x58] sm:$0xff]  ;;  %v277_v57 = vld [vmem:[%s1345_s7 + $0x30] sm:$0xff] }
  0x69   : > { %885 = vmatprep.subr.mxu1 %v334_v26  ;;  %790 = vmatprep.subr.mxu0 %v317_v27  ;;  %v275_v50 = vld [vmem:[%s1345_s7 + $0x20] sm:$0xff]  ;;  %v285_v58 = vld [vmem:[%s1345_s7 + $0x70] sm:$0xff]  ;;  %v288_v60 = vld [vmem:[%s1345_s7 + $0x88] sm:$0xff] }
  0x6a   : > { %886 = vmatpush3.msra.mxu1 %v334_v26  ;;  %791 = vmatpush3.msra.mxu0 %v301_v28  ;;  %v279_v54 = vld [vmem:[%s1345_s7 + $0x40] sm:$0xff]  ;;  %v281_v59 = vld [vmem:[%s1345_s7 + $0x50] sm:$0xff]  ;;  %v280_v61 = vld [vmem:[%s1345_s7 + $0x48] sm:$0xff] }
  0x6b   : > { %887 = vmatprep.subr.mxu1 %v333_v29  ;;  %792 = vmatprep.subr.mxu0 %v316_v30  ;;  %v291_v62 = vld [vmem:[%s1345_s7 + $0xa0] sm:$0xff]  ;;  %v284_v63 = vld [vmem:[%s1345_s7 + $0x68] sm:$0xff]  ;;  %v294_v0 = vld [vmem:[%s1345_s7 + $0xb8] sm:$0xff] }
  0x6c   : > { %888 = vmatpush3.msra.mxu1 %v333_v29  ;;  %793 = vmatpush3.msra.mxu0 %v300_v31  ;;  %v283_v1 = vld [vmem:[%s1345_s7 + $0x60] sm:$0xff]  ;;  %v286_v3 = vld [vmem:[%s1345_s7 + $0x78] sm:$0xff]  ;;  %v289_v5 = vld [vmem:[%s1345_s7 + $0x90] sm:$0xff] }
  0x6d   : > { %889 = vmatprep.subr.mxu1 %v332_v32  ;;  %794 = vmatprep.subr.mxu0 %v315_v33  ;;  %v287_v2 = vld [vmem:[%s1345_s7 + $0x80] sm:$0xff]  ;;  %v290_v4 = vld [vmem:[%s1345_s7 + $0x98] sm:$0xff]  ;;  %v293_v6 = vld [vmem:[%s1345_s7 + $0xb0] sm:$0xff] }
  0x6e   : > { %890 = vmatpush3.msra.mxu1 %v332_v32  ;;  %795 = vmatpush3.msra.mxu0 %v299_v34  ;;  %v292_v7 = vld [vmem:[%s1345_s7 + $0xa8] sm:$0xff]  ;;  %v588_v9 = vld [vmem:[#allocation7 + $0x78] sm:$0xff]  ;;  %v587_v10 = vld [vmem:[#allocation7 + $0x70] sm:$0xff] }
  0x6f   : > { %891 = vmatprep.subr.mxu1 %v331_v35  ;;  %796 = vmatprep.subr.mxu0 %v314_v36  ;;  %v586_v11 = vld [vmem:[#allocation7 + $0x68] sm:$0xff]  ;;  %v585_v12 = vld [vmem:[#allocation7 + $0x60] sm:$0xff]  ;;  %v584_v13 = vld [vmem:[#allocation7 + $0x58] sm:$0xff] }
  0x70   : > { %892 = vmatpush3.msra.mxu1 %v331_v35  ;;  %797 = vmatpush3.msra.mxu0 %v298_v37  ;;  %v583_v14 = vld [vmem:[#allocation7 + $0x50] sm:$0xff]  ;;  %v582_v15 = vld [vmem:[#allocation7 + $0x48] sm:$0xff]  ;;  %v581_v16 = vld [vmem:[#allocation7 + $0x40] sm:$0xff] }
  0x71   : > { %893 = vmatprep.subr.mxu1 %v330_v38  ;;  %798 = vmatprep.subr.mxu0 %v313_v39  ;;  %v580_v17 = vld [vmem:[#allocation7 + $0x38] sm:$0xff]  ;;  %v579_v18 = vld [vmem:[#allocation7 + $0x30] sm:$0xff]  ;;  %v578_v19 = vld [vmem:[#allocation7 + $0x28] sm:$0xff] }
  0x72   : > { %894 = vmatpush3.msra.mxu1 %v330_v38  ;;  %799 = vmatpush3.msra.mxu0 %v297_v40  ;;  %v577_v20 = vld [vmem:[#allocation7 + $0x20] sm:$0xff]  ;;  %v576_v21 = vld [vmem:[#allocation7 + $0x18] sm:$0xff]  ;;  %v575_v22 = vld [vmem:[#allocation7 + $0x10] sm:$0xff] }
  0x73   : > { %895 = vmatprep.subr.mxu1 %v329_v41  ;;  %800 = vmatprep.subr.mxu0 %v312_v42  ;;  %v574_v23 = vld [vmem:[#allocation7 + $0x8] sm:$0xff]  ;;  %v573_v24 = vld [vmem:[#allocation7] sm:$0xff] }
  0x74   : > { %414 = vmatprep.mubr.f32.mxu0 %v272_v43  ;;  %801 = vmatpush3.msra.mxu0 %v296_v44 }
  0x75   : > { %896 = vmatpush3.msra.mxu1 %v329_v41  ;;  %802 = vmatprep.subr.mxu0 %v311_v45 }
  0x76   : > { %897 = vmatprep.subr.mxu1 %v328_v46  ;;  %803 = vmatpush3.msra.mxu0 %v295_v47 }
  0x77   : > { %898 = vmatpush3.msra.mxu1 %v328_v46  ;;  %415 = vmatmul.mubr.f32.vlgmr.msra.gmra.mxu0 %v271_v48  ;;  %v768_v48 = vld [vmem:[%s1429_s2] ss:$0 sm:$0xff] }
  0x78   : > { %899 = vmatprep.subr.mxu1 %v327_v49  ;;  %419 = vmatprep.mubr.f32.mxu0 %v275_v50 }
  0x79   : > { %900 = vmatpush3.msra.mxu1 %v327_v49  ;;  %901 = vmatprep.mubr.f32.mxu1 %v273_v51 }
  0x7a   : > { %902 = vmatmul.mubr.f32.vlgmr.msra.gmra.mxu1 %v276_v52  ;;  %913 = vmatprep.subr.mxu0 %v1181_v8 }
  0x7b   : > { %420 = vmatmul.mubr.f32.gmra.mxu0 %v274_v53  ;;  %904 = vmatprep.mubr.f32.mxu1 %v279_v54 }
  0x7c   : > { %424 = vmatprep.mubr.f32.mxu0 %v278_v55  ;;  %914 = vmatpush3.msra.mxu0 %v588_v9 }
  0x7d   : > { %915 = vmatprep.subr.mxu0 %v1181_v8 }
  0x7e   : > { %905 = vmatmul.mubr.f32.gmra.mxu1 %v282_v56  ;;  %916 = vmatpush3.msra.mxu0 %v587_v10 }
  0x7f   : > { %425 = vmatmul.mubr.f32.gmra.mxu0 %v277_v57  ;;  %907 = vmatprep.mubr.f32.mxu1 %v285_v58 }
  0x80   : > { %429 = vmatprep.mubr.f32.mxu0 %v281_v59  ;;  %917 = vmatprep.subr.mxu0 %v1181_v8 }
  0x81   : > { %918 = vmatpush3.msra.mxu0 %v586_v11 }
  0x82   : > { %908 = vmatmul.mubr.f32.gmra.mxu1 %v288_v60  ;;  %919 = vmatprep.subr.mxu0 %v1181_v8 }
  0x83   : > { %430 = vmatmul.mubr.f32.gmra.mxu0 %v280_v61  ;;  %910 = vmatprep.mubr.f32.mxu1 %v291_v62 }
  0x84   : > { %434 = vmatprep.mubr.f32.mxu0 %v284_v63  ;;  %920 = vmatpush3.msra.mxu0 %v585_v12 }
  0x85   : > { %921 = vmatprep.subr.mxu0 %v1181_v8 }
  0x86   : > { %911 = vmatmul.mubr.f32.gmra.mxu1 %v294_v0  ;;  %922 = vmatpush3.msra.mxu0 %v584_v13 }
  0x87   : > { %435 = vmatmul.mubr.f32.gmra.mxu0 %v283_v1  ;;  %923 = vmatprep.subr.mxu0 %v1181_v8 }
  0x88   : > { %439 = vmatprep.mubr.f32.mxu0 %v287_v2  ;;  %924 = vmatpush3.msra.mxu0 %v583_v14 }
  0x89   : > { %925 = vmatprep.subr.mxu0 %v1181_v8 }
  0x8a   : > { %926 = vmatpush3.msra.mxu0 %v582_v15 }
  0x8b   : > { %440 = vmatmul.mubr.f32.gmra.mxu0 %v286_v3  ;;  %927 = vmatprep.subr.mxu0 %v1181_v8 }
  0x8c   : > { %444 = vmatprep.mubr.f32.mxu0 %v290_v4  ;;  %928 = vmatpush3.msra.mxu0 %v581_v16 }
  0x8d   : > { %929 = vmatprep.subr.mxu0 %v1181_v8 }
  0x8e   : > { %930 = vmatpush3.msra.mxu0 %v580_v17 }
  0x8f   : > { %445 = vmatmul.mubr.f32.gmra.mxu0 %v289_v5  ;;  %931 = vmatprep.subr.mxu0 %v1181_v8 }
  0x90   : > { %449 = vmatprep.mubr.f32.mxu0 %v293_v6  ;;  %932 = vmatpush3.msra.mxu0 %v579_v18 }
  0x91   : > { %933 = vmatprep.subr.mxu0 %v1181_v8 }
  0x92   : > { %934 = vmatpush3.msra.mxu0 %v578_v19 }
  0x93   : > { %450 = vmatmul.mubr.f32.gmra.mxu0 %v292_v7  ;;  %935 = vmatprep.subr.mxu0 %v1181_v8 }
  0x94   : > { %936 = vmatpush3.msra.mxu0 %v577_v20  ;;  %945 = vmatprep.mubr.msk.f32.mxu0 %vm1182_vm0, %v1181_v8 }
  0x95   : > { %937 = vmatprep.subr.mxu0 %v1181_v8 }
  0x96   : > { %938 = vmatpush3.msra.mxu0 %v576_v21 }
  0x97   : > { %939 = vmatprep.subr.mxu0 %v1181_v8 }
  0x98   : > { %940 = vmatpush3.msra.mxu0 %v575_v22 }
  0x99   : > { %941 = vmatprep.subr.mxu0 %v1181_v8 }
  0x9a   : > { %942 = vmatpush3.msra.mxu0 %v574_v23  ;;  %v589_v23 = vld [vmem:[%s1431_s4] sm:$0x1] }
  0x9b   : > { %943 = vmatprep.subr.mxu0 %v1181_v8 }
  0x9c   : > { %944 = vmatpush3.msra.mxu0 %v573_v24 }
 0x137   : > { %v804_v25 = vpop.f32.mrf.mxu0 }
 0x139   : > { %v805_v26 = vpop.f32.mrf.mxu0 }
 0x13a   : > { %v903_v29 = vpop.f32.mrf.mxu1  ;;  %v806_v47 = vadd.f32 %v805_v26, %v804_v25 }
 0x13b   : > { %v807_v27 = vpop.f32.mrf.mxu0 }
 0x13c   : > { %v521_v32 = vpop.f32.mrf.mxu1  ;;  %v417_v59 = vadd.f32 %v806_v47, %v768_v48 }
 0x13d   : > { %v808_v28 = vpop.f32.mrf.mxu0 }
 0x13e   : > { %v906_v34 = vpop.f32.mrf.mxu1  ;;  %v809_v45 = vadd.f32 %v808_v28, %v807_v27  ;;  %v522_v6 = vadd.f32 %v521_v32, %v417_v59 }
 0x13f   : > { %v810_v30 = vpop.f32.mrf.mxu0 }
 0x140   : > { %v531_v37 = vpop.f32.mrf.mxu1  ;;  %v422_v56 = vadd.f32 %v809_v45, %v768_v48 }
 0x141   : > { %v811_v31 = vpop.f32.mrf.mxu0 }
 0x142   : > { %v909_v40 = vpop.f32.mrf.mxu1  ;;  %v812_v51 = vadd.f32 %v811_v31, %v810_v30  ;;  %v527_v2 = vadd.f32 %v903_v29, %v422_v56 }
 0x143   : > { %v813_v33 = vpop.f32.mrf.mxu0 }
 0x144   : > { %v541_v43 = vpop.f32.mrf.mxu1  ;;  %v427_v63 = vadd.f32 %v812_v51, %v768_v48 }
 0x145   : > { %v814_v35 = vpop.f32.mrf.mxu0 }
 0x146   : > { %v912_v50 = vpop.f32.mrf.mxu1  ;;  %v815_v52 = vadd.f32 %v814_v35, %v813_v33  ;;  %v532_v8 = vadd.f32 %v531_v37, %v427_v63 }
 0x147   : > { %v816_v36 = vpop.f32.mrf.mxu0 }
 0x148   : > { %v551_v61 = vpop.f32.mrf.mxu1  ;;  %v432_v62 = vadd.f32 %v815_v52, %v768_v48 }
 0x149   : > { %v817_v38 = vpop.f32.mrf.mxu0 }
 0x14a   : > { %v818_v46 = vadd.f32 %v817_v38, %v816_v36  ;;  %v537_v7 = vadd.f32 %v906_v34, %v432_v62 }
 0x14b   : > { %v819_v39 = vpop.f32.mrf.mxu0 }
 0x14c   : > { %v437_v57 = vadd.f32 %v818_v46, %v768_v48 }
 0x14d   : > { %v820_v41 = vpop.f32.mrf.mxu0 }
 0x14e   : > { %v821_v42 = vadd.f32 %v820_v41, %v819_v39  ;;  %v542_v3 = vadd.f32 %v541_v43, %v437_v57 }
 0x14f   : > { %v822_v44 = vpop.f32.mrf.mxu0 }
 0x150   : > { %v442_v53 = vadd.f32 %v821_v42, %v768_v48  ;;  %v560_v11 = vmax.f32 %v522_v6, %v542_v3 }
 0x151   : > { %v823_v49 = vpop.f32.mrf.mxu0 }
 0x152   : > { %v824_v54 = vadd.f32 %v823_v49, %v822_v44  ;;  %v547_v0 = vadd.f32 %v909_v40, %v442_v53 }
 0x153   : > { %v825_v55 = vpop.f32.mrf.mxu0 }
 0x154   : > { %v447_v58 = vadd.f32 %v824_v54, %v768_v48  ;;  %v561_v9 = vmax.f32 %v527_v2, %v547_v0 }
 0x155   : > { %v826_v60 = vpop.f32.mrf.mxu0 }
 0x156   : > { %v827_v1 = vadd.f32 %v826_v60, %v825_v55  ;;  %v552_v5 = vadd.f32 %v551_v61, %v447_v58  ;;  %v564_v14 = vmax.f32 %v560_v11, %v561_v9 }
 0x158   : > { %v452_v4 = vadd.f32 %v827_v1, %v768_v48  ;;  %v562_v12 = vmax.f32 %v532_v8, %v552_v5 }
 0x15a   : > { %v557_v10 = vadd.f32 %v912_v50, %v452_v4 }
 0x15c   : > { %v563_v13 = vmax.f32 %v537_v7, %v557_v10 }
 0x15e   : > { %v565_v15 = vmax.f32 %v562_v12, %v563_v13 }
 0x160   : > { %v566_v16 = vmax.f32 %v564_v14, %v565_v15 }
 0x162   : > { %v567_v17 = vrot.slane %v566_v16, 4 }
 0x164   : > { %v568_v18 = vmax.f32 %v566_v16, %v567_v17 }
 0x166   : > { %v569_v19 = vrot.slane %v568_v18, 2 }
 0x168   : > { %v570_v20 = vmax.f32 %v568_v18, %v569_v19 }
 0x16a   : > { %v571_v21 = vrot.slane %v570_v20, 1 }
 0x16c   : > { %v572_v22 = vmax.f32 %v570_v20, %v571_v21 }
 0x16e   : > { %946 = vmatmul.mubr.f32.vlgmr.msra.gmra.mxu0 %v572_v22 }
 0x22e   : > { %v656_v24 = vpop.f32.mrf.mxu0 }
 0x22f   : > { %v657_v25 = vadd.f32 %v656_v24, %v589_v23 }
 0x230   : > { %v947_v26 = vpop.f32.mrf.mxu0 }
 0x231   : > { %660 = vst [vmem:[%s270_s12] sm:$0x1] %v657_v25 }
 0x232   : > { %1117 = shalt.err (!%p1114_p9)
}
 0x233   : > { %s1118_s7 = scalar_lea.hbm %s1390_s10, 16  ;;  %s1122_s26 = scalar_lea.hbm %s1432_s5, 32 }
 0x234   : > { %p1119_p13 = scmp.ne.s32.totalorder %s1390_s10, %s1118_s7  ;;  %p1123_p4 = scmp.lt.s32.totalorder %s1390_s10, %s1432_s5 }
 0x235   : > { %p1124_p8 = scmp.lt.s32.totalorder %s1122_s26, %s1118_s7 }
 0x236   : > { %p1120_p5 = pnand %p1119_p13, %p1448_p10 }
 0x237   : > { %p1125_p3 = por %p1124_p8, %p1123_p4 }
 0x238   : > { %p1121_p0 = pneg %p1120_p5 }
 0x23a   : > { %p1126_p11 = pnand %p1125_p3, %p1121_p0 }
 0x23c   : > { %1129 = shalt.err (!%p1126_p11)
}
 0x23d   : > { %961 = dma.vmem_to_hbm [thread:$0]  (%p1448_p10), %s675_s28, 16, %s1390_s10, %s662_s13  }
 0x23e PF: > { %s686_s11 = sand.u32 1, %s1160_s18   ;;  %p1449_p1 = scmp.ne.s32.totalorder %s1438_s25, 0 }
 0x23f   : > { %p1450_p2 = scmp.ge.s32.totalorder %s1172_s21, 2  ;;  %s687_s12 = scalar_lea.sflag [#allocation4], %s686_s11 }
 0x241   : > { %p975_p6 = pnand %p1450_p2, %p1449_p1 }
 0x243   : > { %p976_p12 = pneg %p975_p6 }
 0x245   : > { %1155 = dma.done.wait (%p976_p12), %s687_s12, 16  }
 0x246   : > { %1157 = vsyncadd (%p976_p12), %s687_s12, 4294967280  ;;  %p19_p7 = scmp.ge.s32.totalorder %s1286_s15, 4   ;;  %s1451_s18 = smov %s1164_s19 }
 0x247   : > { %s1452_s19 = smov %s1168_s20  ;;  %s1453_s20 = smov %s1302_s27 }
 0x248   : > { %s1454_s21 = smov %s1286_s15  ;;  %21 = sbr.rel (!%p19_p7) target bundleno = 6 (0x6), region = 93 }
 0x24d   :  { %691 = vsyncpa [#allocation3], 1 }
 0x24e   :  { %693 = vsyncpa [#allocation3 + $0x1], 1 }
 0x24f   :  { %694 = vsyncpa [#allocation6], 1 }
 0x250   :  { %695 = vsyncpa [#allocation4], 1 }
 0x251   :  { %697 = vsyncpa [#allocation4 + $0x1], 1 }

</bundles_post_ra>
